<compile_context>
chip_gen: v6e
topology: v6e:2x2x1
jax: 0.10.0
libtpu: 0.0.40
codegen_flags: <defaults>
</compile_context>

<pallas_src>
import math
import functools

import jax
import jax.numpy as jnp
from jax.experimental import pallas as pl
from jax.experimental.pallas import tpu as pltpu

LN_EPS = 1e-5
_INV_SQRT2 = 1.0 / math.sqrt(2.0)
_SQRT_2_OVER_PI = math.sqrt(2.0 / math.pi)

_SUBLANE = 8  # f32 sublane quantum for the row tile


def _gelu(x, approx):
    if approx:
        # tanh-form GELU: transcendental goes to the EUP slot (nearly free under
        # MXU work); small numerics delta vs nn.GELU()'s exact erf.
        x3 = x * x * x
        return 0.5 * x * (1.0 + jnp.tanh(_SQRT_2_OVER_PI * (x + 0.044715 * x3)))
    # PyTorch nn.GELU() default: exact erf formulation.
    return 0.5 * x * (1.0 + jax.lax.erf(x * _INV_SQRT2))


def ffn_kernel(x_ref, g_ref, beta_ref, w1_ref, b1_ref, w2_ref, b2_ref, o_ref,
               ln_ref, acc_ref, *, act_dtype, approx_gelu):
    j = pl.program_id(1)          # hidden-dim chunk (reduction axis, innermost)

    @pl.when(j == 0)
    def _():
        # LayerNorm once per row tile.  Both lane reductions are issued directly
        # off x (single pass: E[x^2] - E[x]^2) so they overlap on the XLU.
        x = x_ref[...].astype(jnp.float32)
        mean = jnp.mean(x, axis=-1, keepdims=True)
        mean_sq = jnp.mean(x * x, axis=-1, keepdims=True)
        var = jnp.maximum(mean_sq - mean * mean, 0.0)
        ln = (x - mean) * jax.lax.rsqrt(var + LN_EPS) * g_ref[...] + beta_ref[...]
        ln_ref[...] = ln.astype(ln_ref.dtype)        # cached MXU operand
        acc_ref[...] = jnp.zeros_like(acc_ref)

    # Linear 1 (hidden chunk j) + GELU.  MXU matmul in the weight dtype with
    # f32 accumulation; activation math in act_dtype (f32, or bf16 on chips
    # with a bf16 VPU when the tanh path is selected).
    h = jnp.dot(ln_ref[...], w1_ref[...], preferred_element_type=jnp.float32)
    h = _gelu((h + b1_ref[...]).astype(act_dtype), approx_gelu)

    # Linear 2 (hidden chunk j), accumulated in f32.
    acc_ref[...] += jnp.dot(h.astype(w2_ref.dtype), w2_ref[...],
                            preferred_element_type=jnp.float32)

    @pl.when(j == pl.num_programs(1) - 1)
    def _():
        o_ref[...] = _gelu(acc_ref[...] + b2_ref[...],
                           approx_gelu).astype(o_ref.dtype)


def _round_up(x, m):
    return (x + m - 1) // m * m


def _vmem_bytes(tm, dim, th, x_itemsize, mxu_itemsize, w_bufs):
    io = 2 * 2 * tm * dim * x_itemsize                  # x + out tiles, double-buffered
    weights = w_bufs * 2 * dim * th * mxu_itemsize      # W1 chunk + W2 chunk
    vectors = 2 * th * 4 + 3 * dim * 4                  # b1 chunk + gamma/beta/b2
    scratch = tm * dim * mxu_itemsize + tm * dim * 4    # cached LN tile + f32 acc
    temps = 2 * tm * th * 4 + 2 * tm * dim * 4          # live f32 temporaries
    return io + weights + vectors + scratch + temps


def _vmem_capacity_bytes():
    try:
        return int(pltpu.get_tpu_info().vmem_capacity_bytes)
    except Exception:
        return 64 << 20          # conservative fallback (v7x per-core VMEM)


def _has_bf16_vpu():
    try:
        kind = jax.devices()[0].device_kind.lower()
    except Exception:
        return False
    return not any(tag in kind for tag in ("v2", "v3", "v4", "v5"))


def _choose_tiles(M, dim, x_itemsize, mxu_itemsize, budget):
    """Pick (row_tile, hidden_tile, weight_buffers) that fit the VMEM budget."""
    base_rows = 1024 if x_itemsize <= 2 else 512
    tm = min(base_rows, _round_up(M, _SUBLANE))
    if M > _SUBLANE:
        # Keep >= 2 row tiles so the 'parallel' axis can feed both v7x TCs.
        tm = min(tm, _round_up(-(-M // 2), _SUBLANE))
    tm = max(_SUBLANE, _round_up(tm, _SUBLANE))

    can_stream = (dim % 128 == 0) and (dim > 128)

    while True:
        # Prefer fully-resident single-buffered weights (fetched from HBM once).
        if _vmem_bytes(tm, dim, dim, x_itemsize, mxu_itemsize, 1) <= budget:
            return tm, dim, 1
        if can_stream:
            # Stream the hidden dim: largest 128-multiple divisor of dim that fits
            # (exact divisors only, so no partial weight blocks pollute the sum).
            th = max(128, (dim // 2 // 128) * 128)
            while th >= 128:
                if dim % th == 0 and _vmem_bytes(tm, dim, th, x_itemsize,
                                                 mxu_itemsize, 2) <= budget:
                    return tm, th, 2
                th -= 128
        if tm <= _SUBLANE:
            # TODO(synk): two-level pipeline (emit_pipeline over both weight axes)
            #             for dims too large even with an 8-row tile.
            return _SUBLANE, dim, 1
        tm = max(_SUBLANE, _round_up(tm // 2, _SUBLANE))


def prepare_params(gamma, beta, w1, b1, w2, b2, mxu_dtype=jnp.bfloat16):
    """Cast/reshape the FFN parameters ONCE, outside the per-call jit.

    w1/w2 are (in, out), i.e. the transpose of PyTorch nn.Linear.weight.
    Pre-casting here avoids re-reading/re-writing 2*dim^2 weight elements in
    HBM on every forward call.
    """
    dim = w1.shape[0]
    return (gamma.reshape(1, dim).astype(jnp.float32),
            beta.reshape(1, dim).astype(jnp.float32),
            w1.astype(mxu_dtype),
            b1.reshape(1, dim).astype(jnp.float32),
            w2.astype(mxu_dtype),
            b2.reshape(1, dim).astype(jnp.float32))


@functools.partial(jax.jit,
                   static_argnames=("block_rows", "mxu_dtype", "approx_gelu"))
def feed_forward(x, gamma, beta, w1, b1, w2, b2, *, block_rows=None,
                 mxu_dtype=jnp.bfloat16, approx_gelu=False):
    """Fused LayerNorm -> Linear -> GELU -> Linear -> GELU.

    x: (..., dim).  gamma/beta/b1/b2: (dim,) or (1, dim).  w1/w2: (dim, dim)
    laid out (in, out).  Route parameters through prepare_params() once so the
    weight cast never runs per call.

    mxu_dtype: matmul operand dtype (accumulation is always f32).  bf16 is the
      fast path on all generations; float32 gives exact nn.Linear numerics but
      runs the MXU at a small fraction of peak (slow path, parity checks only).
      TODO(synk): fp8 weight/activation path with per-channel scales for v7x.
    approx_gelu: tanh-form GELU (EUP-routed transcendental; on chips with a
      bf16 VPU the hidden activation runs in bf16).  Small numerics delta vs
      nn.GELU()'s exact erf.
    """
    orig_shape = x.shape
    dim = orig_shape[-1]
    x2d = x.reshape(-1, dim)
    M = x2d.shape[0]

    mxu_dtype = jnp.dtype(mxu_dtype)
    x_itemsize = jnp.dtype(x.dtype).itemsize
    mxu_itemsize = mxu_dtype.itemsize

    vmem_cap = _vmem_capacity_bytes()
    budget = (vmem_cap * 3) // 4            # headroom for compiler temporaries

    if block_rows is not None:
        tm = max(_SUBLANE,
                 _round_up(min(block_rows, _round_up(M, _SUBLANE)), _SUBLANE))
        th, w_bufs = dim, 1
    else:
        tm, th, w_bufs = _choose_tiles(M, dim, x_itemsize, mxu_itemsize, budget)

    n_i = pl.cdiv(M, tm)   # row tiles ('parallel'); edge block may be partial
    n_j = dim // th        # hidden-dim chunks ('arbitrary' reduction axis)

    # Hidden bias+GELU dtype: bf16 on chips with a bf16 VPU (halves VALU cost
    # and drops a cast pass), f32 otherwise / for the exact-erf path.
    act_dtype = jnp.float32
    if approx_gelu and mxu_dtype == jnp.bfloat16 and _has_bf16_vpu():
        act_dtype = jnp.bfloat16

    # No-op reshapes/casts when prepare_params() was used.
    gamma2 = gamma.reshape(1, dim).astype(jnp.float32)
    beta2 = beta.reshape(1, dim).astype(jnp.float32)
    b1_2 = b1.reshape(1, dim).astype(jnp.float32)
    b2_2 = b2.reshape(1, dim).astype(jnp.float32)
    w1c = w1.astype(mxu_dtype)
    w2c = w2.astype(mxu_dtype)

    row_spec = pl.BlockSpec((tm, dim), lambda i, j: (i, 0))
    const_vec = pl.BlockSpec((1, dim), lambda i, j: (0, 0),
                             pipeline_mode=pl.Buffered(1))
    if n_j > 1:
        # Stream W1 columns / W2 rows (and the matching b1 chunk) over j.
        w1_spec = pl.BlockSpec((dim, th), lambda i, j: (0, j))
        w2_spec = pl.BlockSpec((th, dim), lambda i, j: (j, 0))
        b1_spec = pl.BlockSpec((1, th), lambda i, j: (0, j))
    else:
        # Weights fit VMEM: keep them resident in a single buffer (one HBM fetch).
        # TODO(synk): hide the cold first-step weight DMA behind a cross-call
        #             prefetch (P10) for latency-critical small-M calls.
        w1_spec = pl.BlockSpec((dim, dim), lambda i, j: (0, 0),
                               pipeline_mode=pl.Buffered(1))
        w2_spec = pl.BlockSpec((dim, dim), lambda i, j: (0, 0),
                               pipeline_mode=pl.Buffered(1))
        b1_spec = const_vec

    est = _vmem_bytes(tm, dim, th, x_itemsize, mxu_itemsize, w_bufs)
    vmem_limit = int(min(vmem_cap, max(32 << 20, 2 * est)))

    weight_passes = 1 if n_j == 1 else n_i
    cost = pl.CostEstimate(
        flops=4 * M * dim * dim,                      # two (tm,dim)@(dim,*) matmuls
        transcendentals=2 * M * dim + M,              # two GELUs + rsqrt per row
        bytes_accessed=(2 * M * dim * x_itemsize
                        + weight_passes * 2 * dim * dim * mxu_itemsize
                        + 4 * dim * 4))

    out = pl.pallas_call(
        functools.partial(ffn_kernel, act_dtype=act_dtype,
                          approx_gelu=approx_gelu),
        out_shape=jax.ShapeDtypeStruct((M, dim), x.dtype),
        grid_spec=pltpu.PrefetchScalarGridSpec(
            num_scalar_prefetch=0,
            grid=(n_i, n_j),
            in_specs=[row_spec, const_vec, const_vec, w1_spec, b1_spec,
                      w2_spec, const_vec],
            out_specs=row_spec,
            scratch_shapes=[pltpu.VMEM((tm, dim), mxu_dtype),     # cached LN(x)
                            pltpu.VMEM((tm, dim), jnp.float32)],  # f32 accumulator
        ),
        compiler_params=pltpu.CompilerParams(
            dimension_semantics=("parallel", "arbitrary"),
            vmem_limit_bytes=vmem_limit,
        ),
        cost_estimate=cost,
    )(x2d, gamma2, beta2, w1c, b1_2, w2c, b2_2)

    return out.reshape(orig_shape)


def _reference(x, gamma, beta, w1, b1, w2, b2):
    mean = jnp.mean(x, axis=-1, keepdims=True)
    var = jnp.mean((x - mean) ** 2, axis=-1, keepdims=True)
    h = (x - mean) / jnp.sqrt(var + LN_EPS) * gamma + beta
    h = jax.nn.gelu(h @ w1 + b1, approximate=False)
    h = jax.nn.gelu(h @ w2 + b2, approximate=False)
    return h


if __name__ == "__main__":
    batch, seq, dim = 2, 8, 32
    key = jax.random.PRNGKey(0)
    kx, kw1, kb1, kw2, kb2, kx2 = jax.random.split(key, 6)

    x = jax.random.normal(kx, (batch, seq, dim), dtype=jnp.float32)

    # LayerNorm params (PyTorch default init: gamma=1, beta=0).
    gamma = jnp.ones((dim,), jnp.float32)
    beta = jnp.zeros((dim,), jnp.float32)

    # Linear params, deterministic init (uniform with PyTorch's bound 1/sqrt(in)).
    bound = 1.0 / math.sqrt(dim)
    w1 = jax.random.uniform(kw1, (dim, dim), jnp.float32, -bound, bound)  # (in, out)
    b1 = jax.random.uniform(kb1, (dim,), jnp.float32, -bound, bound)
    w2 = jax.random.uniform(kw2, (dim, dim), jnp.float32, -bound, bound)
    b2 = jax.random.uniform(kb2, (dim,), jnp.float32, -bound, bound)

    y_ref = _reference(x, gamma, beta, w1, b1, w2, b2)

    # Exact path (f32 MXU operands): parity check against nn.Sequential forward.
    p_f32 = prepare_params(gamma, beta, w1, b1, w2, b2, mxu_dtype=jnp.float32)
    y_f32 = jax.block_until_ready(feed_forward(x, *p_f32, mxu_dtype=jnp.float32))
    assert y_f32.shape == x.shape
    assert jnp.allclose(y_f32, y_ref, atol=1e-4, rtol=1e-4), "f32 path mismatch"

    # Default fast path: bf16 MXU operands (weights pre-cast once), exact GELU.
    p_bf16 = prepare_params(gamma, beta, w1, b1, w2, b2, mxu_dtype=jnp.bfloat16)
    y_bf16 = jax.block_until_ready(feed_forward(x, *p_bf16))
    assert y_bf16.shape == x.shape
    assert jnp.allclose(y_bf16, y_ref, atol=5e-2, rtol=5e-2), "bf16 path mismatch"

    # Fast path + tanh GELU (EUP routing, bf16 hidden math on v6e/v7x).
    y_tanh = jax.block_until_ready(feed_forward(x, *p_bf16, approx_gelu=True))
    assert jnp.allclose(y_tanh, y_ref, atol=5e-2, rtol=5e-2), "tanh-GELU path mismatch"

    # Ragged token count: exercises the partial edge block (no pad/slice passes).
    x_odd = jax.random.normal(kx2, (3, 5, dim), dtype=jnp.float32)
    y_odd = jax.block_until_ready(feed_forward(x_odd, *p_bf16))
    y_odd_ref = _reference(x_odd, gamma, beta, w1, b1, w2, b2)
    assert jnp.allclose(y_odd, y_odd_ref, atol=5e-2, rtol=5e-2), "partial-block mismatch"

    print("KERNEL_OK")
</pallas_src>

<mosaic_0001>
module attributes {stable_mosaic.version = 11 : i64} {
  func.func @ffn_kernel(%arg0: i32, %arg1: i32, %arg2: memref<8x32xf32, #tpu.memory_space<vmem>>, %arg3: memref<1x32xf32, #tpu.memory_space<vmem>>, %arg4: memref<1x32xf32, #tpu.memory_space<vmem>>, %arg5: memref<32x32xf32, #tpu.memory_space<vmem>>, %arg6: memref<1x32xf32, #tpu.memory_space<vmem>>, %arg7: memref<32x32xf32, #tpu.memory_space<vmem>>, %arg8: memref<1x32xf32, #tpu.memory_space<vmem>>, %arg9: memref<8x32xf32, #tpu.memory_space<vmem>>, %arg10: memref<8x32xf32, #tpu.memory_space<vmem>>, %arg11: memref<8x32xf32, #tpu.memory_space<vmem>>) attributes {dimension_semantics = [#tpu.dimension_semantics<parallel>, #tpu.dimension_semantics<arbitrary>], iteration_bounds = array<i64: 2, 1>, scalar_prefetch = 0 : i64, scratch_operands = 2 : i64, tpu.core_type = #tpu.core_type<tc>, window_params = [{transform_indices = @transform_0, window_bounds = array<i64: 8, 32>}, {pipeline_mode = #tpu.pipeline_mode<synchronous>, transform_indices = @transform_1, window_bounds = array<i64: 1, 32>}, {pipeline_mode = #tpu.pipeline_mode<synchronous>, transform_indices = @transform_2, window_bounds = array<i64: 1, 32>}, {pipeline_mode = #tpu.pipeline_mode<synchronous>, transform_indices = @transform_3, window_bounds = array<i64: 32, 32>}, {pipeline_mode = #tpu.pipeline_mode<synchronous>, transform_indices = @transform_4, window_bounds = array<i64: 1, 32>}, {pipeline_mode = #tpu.pipeline_mode<synchronous>, transform_indices = @transform_5, window_bounds = array<i64: 32, 32>}, {pipeline_mode = #tpu.pipeline_mode<synchronous>, transform_indices = @transform_6, window_bounds = array<i64: 1, 32>}, {transform_indices = @transform_7, window_bounds = array<i64: 8, 32>}]} {
    %c0_i32 = arith.constant 0 : i32
    %0 = arith.cmpi eq, %arg1, %c0_i32 : i32
    %1 = arith.extui %0 : i1 to i32
    %c0_i32_0 = arith.constant 0 : i32
    %2 = arith.cmpi ne, %1, %c0_i32_0 : i32
    scf.if %2 {
      %c0_18 = arith.constant 0 : index
      %c0_19 = arith.constant 0 : index
      %25 = vector.load %arg2[%c0_18, %c0_19] : memref<8x32xf32, #tpu.memory_space<vmem>>, vector<8x32xf32>
      %cst_20 = arith.constant dense<0.000000e+00> : vector<8xf32>
      %26 = vector.multi_reduction <add>, %25, %cst_20 [1] : vector<8x32xf32> to vector<8xf32>
      %27 = vector.shape_cast %26 : vector<8xf32> to vector<8x1xf32>
      %cst_21 = arith.constant 3.200000e+01 : f32
      %28 = vector.broadcast %cst_21 : f32 to vector<8x1xf32>
      %29 = arith.divf %27, %28 : vector<8x1xf32>
      %30 = arith.mulf %25, %25 : vector<8x32xf32>
      %cst_22 = arith.constant dense<0.000000e+00> : vector<8xf32>
      %31 = vector.multi_reduction <add>, %30, %cst_22 [1] : vector<8x32xf32> to vector<8xf32>
      %32 = vector.shape_cast %31 : vector<8xf32> to vector<8x1xf32>
      %cst_23 = arith.constant 3.200000e+01 : f32
      %33 = vector.broadcast %cst_23 : f32 to vector<8x1xf32>
      %34 = arith.divf %32, %33 : vector<8x1xf32>
      %35 = arith.mulf %29, %29 : vector<8x1xf32>
      %36 = arith.subf %34, %35 : vector<8x1xf32>
      %cst_24 = arith.constant 0.000000e+00 : f32
      %37 = vector.broadcast %cst_24 : f32 to vector<8x1xf32>
      %38 = arith.maximumf %36, %37 : vector<8x1xf32>
      %39 = vector.broadcast %29 : vector<8x1xf32> to vector<8x32xf32>
      %40 = arith.subf %25, %39 : vector<8x32xf32>
      %cst_25 = arith.constant 9.99999974E-6 : f32
      %41 = vector.broadcast %cst_25 : f32 to vector<8x1xf32>
      %42 = arith.addf %38, %41 : vector<8x1xf32>
      %43 = math.rsqrt %42 : vector<8x1xf32>
      %44 = vector.broadcast %43 : vector<8x1xf32> to vector<8x32xf32>
      %45 = arith.mulf %40, %44 : vector<8x32xf32>
      %c0_26 = arith.constant 0 : index
      %c0_27 = arith.constant 0 : index
      %46 = vector.load %arg3[%c0_26, %c0_27] : memref<1x32xf32, #tpu.memory_space<vmem>>, vector<1x32xf32>
      %47 = vector.broadcast %46 : vector<1x32xf32> to vector<8x32xf32>
      %48 = arith.mulf %45, %47 : vector<8x32xf32>
      %c0_28 = arith.constant 0 : index
      %c0_29 = arith.constant 0 : index
      %49 = vector.load %arg4[%c0_28, %c0_29] : memref<1x32xf32, #tpu.memory_space<vmem>>, vector<1x32xf32>
      %50 = vector.broadcast %49 : vector<1x32xf32> to vector<8x32xf32>
      %51 = arith.addf %48, %50 : vector<8x32xf32>
      %c0_30 = arith.constant 0 : index
      %c0_31 = arith.constant 0 : index
      %52 = vector.load %arg10[%c0_30, %c0_31] : memref<8x32xf32, #tpu.memory_space<vmem>>, vector<8x32xf32>
      tpu.vector_store %arg10[%c0_30, %c0_31], %51 {strides = array<i32>} : memref<8x32xf32, #tpu.memory_space<vmem>>, vector<8x32xf32>,
      %cst_32 = arith.constant 0.000000e+00 : f32
      %53 = vector.broadcast %cst_32 : f32 to vector<8x32xf32>
      %c0_33 = arith.constant 0 : index
      %c0_34 = arith.constant 0 : index
      %54 = vector.load %arg11[%c0_33, %c0_34] : memref<8x32xf32, #tpu.memory_space<vmem>>, vector<8x32xf32>
      tpu.vector_store %arg11[%c0_33, %c0_34], %53 {strides = array<i32>} : memref<8x32xf32, #tpu.memory_space<vmem>>, vector<8x32xf32>,
    } else {
    }
    %c0 = arith.constant 0 : index
    %c0_1 = arith.constant 0 : index
    %3 = vector.load %arg10[%c0, %c0_1] : memref<8x32xf32, #tpu.memory_space<vmem>>, vector<8x32xf32>
    %c0_2 = arith.constant 0 : index
    %c0_3 = arith.constant 0 : index
    %4 = vector.load %arg5[%c0_2, %c0_3] : memref<32x32xf32, #tpu.memory_space<vmem>>, vector<32x32xf32>
    %cst = arith.constant dense<0.000000e+00> : vector<8x32xf32>
    %5 = tpu.matmul %3, %4, %cst {dimension_numbers = #tpu.dot_dimension_numbers<[1], [0], [0], [1], [0, 0, 1, 1], [], []>} : vector<8x32xf32>, vector<32x32xf32>, vector<8x32xf32> -> vector<8x32xf32>
    %c0_4 = arith.constant 0 : index
    %c0_5 = arith.constant 0 : index
    %6 = vector.load %arg6[%c0_4, %c0_5] : memref<1x32xf32, #tpu.memory_space<vmem>>, vector<1x32xf32>
    %7 = vector.broadcast %6 : vector<1x32xf32> to vector<8x32xf32>
    %8 = arith.addf %5, %7 : vector<8x32xf32>
    %cst_6 = arith.constant 5.000000e-01 : f32
    %9 = vector.broadcast %cst_6 : f32 to vector<8x32xf32>
    %10 = arith.mulf %9, %8 : vector<8x32xf32>
    %cst_7 = arith.constant 0.707106769 : f32
    %11 = vector.broadcast %cst_7 : f32 to vector<8x32xf32>
    %12 = arith.mulf %8, %11 : vector<8x32xf32>
    %13 = math.erf %12 : vector<8x32xf32>
    %cst_8 = arith.constant 1.000000e+00 : f32
    %14 = vector.broadcast %cst_8 : f32 to vector<8x32xf32>
    %15 = arith.addf %14, %13 : vector<8x32xf32>
    %16 = arith.mulf %10, %15 : vector<8x32xf32>
    %c0_9 = arith.constant 0 : index
    %c0_10 = arith.constant 0 : index
    %17 = vector.load %arg11[%c0_9, %c0_10] : memref<8x32xf32, #tpu.memory_space<vmem>>, vector<8x32xf32>
    %c0_11 = arith.constant 0 : index
    %c0_12 = arith.constant 0 : index
    %18 = vector.load %arg7[%c0_11, %c0_12] : memref<32x32xf32, #tpu.memory_space<vmem>>, vector<32x32xf32>
    %cst_13 = arith.constant dense<0.000000e+00> : vector<8x32xf32>
    %19 = tpu.matmul %16, %18, %cst_13 {dimension_numbers = #tpu.dot_dimension_numbers<[1], [0], [0], [1], [0, 0, 1, 1], [], []>} : vector<8x32xf32>, vector<32x32xf32>, vector<8x32xf32> -> vector<8x32xf32>
    %20 = arith.addf %17, %19 : vector<8x32xf32>
    %c0_14 = arith.constant 0 : index
    %c0_15 = arith.constant 0 : index
    %21 = vector.load %arg11[%c0_14, %c0_15] : memref<8x32xf32, #tpu.memory_space<vmem>>, vector<8x32xf32>
    tpu.vector_store %arg11[%c0_14, %c0_15], %20 {strides = array<i32>} : memref<8x32xf32, #tpu.memory_space<vmem>>, vector<8x32xf32>,
    %c0_i32_16 = arith.constant 0 : i32
    %22 = arith.cmpi eq, %arg1, %c0_i32_16 : i32
    %23 = arith.extui %22 : i1 to i32
    %c0_i32_17 = arith.constant 0 : i32
    %24 = arith.cmpi ne, %23, %c0_i32_17 : i32
    scf.if %24 {
      %c0_18 = arith.constant 0 : index
      %c0_19 = arith.constant 0 : index
      %25 = vector.load %arg11[%c0_18, %c0_19] : memref<8x32xf32, #tpu.memory_space<vmem>>, vector<8x32xf32>
      %c0_20 = arith.constant 0 : index
      %c0_21 = arith.constant 0 : index
      %26 = vector.load %arg8[%c0_20, %c0_21] : memref<1x32xf32, #tpu.memory_space<vmem>>, vector<1x32xf32>
      %27 = vector.broadcast %26 : vector<1x32xf32> to vector<8x32xf32>
      %28 = arith.addf %25, %27 : vector<8x32xf32>
      %cst_22 = arith.constant 5.000000e-01 : f32
      %29 = vector.broadcast %cst_22 : f32 to vector<8x32xf32>
      %30 = arith.mulf %29, %28 : vector<8x32xf32>
      %cst_23 = arith.constant 0.707106769 : f32
      %31 = vector.broadcast %cst_23 : f32 to vector<8x32xf32>
      %32 = arith.mulf %28, %31 : vector<8x32xf32>
      %33 = math.erf %32 : vector<8x32xf32>
      %cst_24 = arith.constant 1.000000e+00 : f32
      %34 = vector.broadcast %cst_24 : f32 to vector<8x32xf32>
      %35 = arith.addf %34, %33 : vector<8x32xf32>
      %36 = arith.mulf %30, %35 : vector<8x32xf32>
      %c0_25 = arith.constant 0 : index
      %c0_26 = arith.constant 0 : index
      %37 = vector.load %arg9[%c0_25, %c0_26] : memref<8x32xf32, #tpu.memory_space<vmem>>, vector<8x32xf32>
      tpu.vector_store %arg9[%c0_25, %c0_26], %36 {strides = array<i32>} : memref<8x32xf32, #tpu.memory_space<vmem>>, vector<8x32xf32>,
    } else {
    }
    return
  }
  func.func @transform_0(%arg0: i32, %arg1: i32) -> (i32, i32) {
    %c0_i32 = arith.constant 0 : i32
    %c0_i32_0 = arith.constant 0 : i32
    return %arg0, %c0_i32 : i32, i32
  }
  func.func @transform_1(%arg0: i32, %arg1: i32) -> (i32, i32) {
    %c0_i32 = arith.constant 0 : i32
    %c0_i32_0 = arith.constant 0 : i32
    %c0_i32_1 = arith.constant 0 : i32
    return %c0_i32, %c0_i32_0 : i32, i32
  }
  func.func @transform_2(%arg0: i32, %arg1: i32) -> (i32, i32) {
    %c0_i32 = arith.constant 0 : i32
    %c0_i32_0 = arith.constant 0 : i32
    %c0_i32_1 = arith.constant 0 : i32
    return %c0_i32, %c0_i32_0 : i32, i32
  }
  func.func @transform_3(%arg0: i32, %arg1: i32) -> (i32, i32) {
    %c0_i32 = arith.constant 0 : i32
    %c0_i32_0 = arith.constant 0 : i32
    %c0_i32_1 = arith.constant 0 : i32
    return %c0_i32, %c0_i32_0 : i32, i32
  }
  func.func @transform_4(%arg0: i32, %arg1: i32) -> (i32, i32) {
    %c0_i32 = arith.constant 0 : i32
    %c0_i32_0 = arith.constant 0 : i32
    %c0_i32_1 = arith.constant 0 : i32
    return %c0_i32, %c0_i32_0 : i32, i32
  }
  func.func @transform_5(%arg0: i32, %arg1: i32) -> (i32, i32) {
    %c0_i32 = arith.constant 0 : i32
    %c0_i32_0 = arith.constant 0 : i32
    %c0_i32_1 = arith.constant 0 : i32
    return %c0_i32, %c0_i32_0 : i32, i32
  }
  func.func @transform_6(%arg0: i32, %arg1: i32) -> (i32, i32) {
    %c0_i32 = arith.constant 0 : i32
    %c0_i32_0 = arith.constant 0 : i32
    %c0_i32_1 = arith.constant 0 : i32
    return %c0_i32, %c0_i32_0 : i32, i32
  }
  func.func @transform_7(%arg0: i32, %arg1: i32) -> (i32, i32) {
    %c0_i32 = arith.constant 0 : i32
    %c0_i32_0 = arith.constant 0 : i32
    return %arg0, %c0_i32 : i32, i32
  }
}

</mosaic_0001>

<bundles_post_ra>
// kernel: feed_forward.1
= control target key start
LH: loop header
LB: loop body
LE: loop exit
PB: predicated region body
PF: predicated region fallthrough
CT: control target
= control target key end

     0   :  { %s1236_s0 = inlined_call_operand.hbm [shape: f32[16,32], index: 0, kind: input, shape index: {}]   ;;  %s1237_s1 = inlined_call_operand.vmem [shape: f32[1,32], index: 1, kind: input, shape index: {}]   ;;  %s1238_s2 = inlined_call_operand.vmem [shape: f32[1,32], index: 2, kind: input, shape index: {}]   ;;  %s1239_s3 = inlined_call_operand.hbm [shape: f32[32,32], index: 3, kind: input, shape index: {}]   ;;  %s1240_s4 = inlined_call_operand.vmem [shape: f32[1,32], index: 4, kind: input, shape index: {}]   ;;  %s1241_s5 = inlined_call_operand.hbm [shape: f32[32,32], index: 5, kind: input, shape index: {}]   ;;  %s1242_s6 = inlined_call_operand.vmem [shape: f32[1,32], index: 6, kind: input, shape index: {}]   ;;  %s1243_s7 = inlined_call_operand.hbm [shape: f32[16,32], index: 7, kind: output, shape index: {}]  }
   0x1   :  { %1248 = sst [smem:[#allocation15_spill]] %s1239_s3 }
   0x2   :  { %1249 = sst [smem:[#allocation16_spill]] %s1241_s5 }
   0x3   :  { %12 = vsyncpa [#allocation5], 0 }
   0x4   :  { %14 = vsyncpa [#allocation5 + $0x1], 0 }
   0x5   :  { %15 = vsyncpa [#allocation8], 0 }
   0x6   :  { %16 = vsyncpa [#allocation6], 0 }
   0x7   :  { %18 = vsyncpa [#allocation6 + $0x1], 0  ;;  %s1038_s24 = smov 0   ;;  %s1040_s25 = smov 0  }
   0x8   :  { %s1042_s26 = smov 0   ;;  %s1044_s27 = smov 0  }
   0x9   :  { %s1046_s28 = smov 0   ;;  %s1048_s29 = smov 0  }
   0xa LB: > { %s676_s30 = sadd.s32 4294967295, %s988_s29   ;;  %s677_s8 = sadd.s32 4294967294, %s988_s29   ;;  %s988_s29 = sphi %s1048_s29, %s24_s29   ;;  %s984_s28 = sphi %s1046_s28, %s1270_s28   ;;  %s980_s27 = sphi %s1044_s27, %s1269_s27   ;;  %s976_s26 = sphi %s1042_s26, %s1268_s26   ;;  %s972_s25 = sphi %s1040_s25, %s1267_s25   ;;  %s968_s24 = sphi %s1038_s24, %s1266_s24  }
   0xb   : > { %p56_p0 = scmp.ne.s32.totalorder %s972_s25, %s968_s24  ;;  %p1072_p1 = scmp.eq.s32.totalorder %s676_s30, 0 }
   0xc   : > { %p1076_p2 = scmp.eq.s32.totalorder %s676_s30, 1  ;;  %p212_p3 = scmp.eq.s32.totalorder %s677_s8, 1 }
   0xd   : > { %s1250_s9 = scalar_select %p1072_p1, 1, 0 }
   0xe   : > { %p1082_p4 = por %p1072_p1, %p56_p0  ;;  %p678_p5 = scmp.ge.s32.totalorder %s988_s29, 1 }
   0xf   : > { %p1087_p6 = por %p212_p3, %p56_p0  ;;  %p219_p7 = scmp.lt.s32.totalorder %s988_s29, 3 }
  0x10   : > { %s1252_s11 = scalar_select %p1082_p4, 1, 0 }
  0x11   : > { %s1253_s12 = scalar_select %p1087_p6, 1, 0 }
  0x12   : > { %p1092_p8 = pnand %p678_p5, %p219_p7  ;;  %s990_s14 = smov [#allocation7]  }
  0x13   : > { %s237_s15 = sshll.u32 %s990_s14, 4  ;;  %s991_s17 = smov [#allocation9]   ;;  %s238_s15 = int_to_ptr.vmem [resolvable:$true] %s237_s15 }
  0x14   : > { %p743_p9 = pneg %p1092_p8  ;;  %s253_s18 = sshll.u32 %s991_s17, 4  ;;  %s254_s18 = int_to_ptr.vmem [resolvable:$true] %s253_s18 }
  0x15   : > { %s835_s19 = scalar_lea.vmem %s238_s15, 512  ;;  %p843_p5 = scmp.lt.s32.totalorder %s238_s15, %s238_s15 }
  0x16   : > { %p1101_p11 = pnand %p743_p9, %p1072_p1  ;;  %p836_p13 = scmp.ne.s32.totalorder %s238_s15, %s835_s19 }
  0x17   : > { %p844_p7 = scmp.lt.s32.totalorder %s835_s19, %s835_s19 }
  0x18   : > { %p826_p12 = pneg %p1101_p11 }
  0x19   : > { %p845_p10 = por %p844_p7, %p843_p5 }
  0x1a   : > { %p838_p0 = pnand %p836_p13, %p826_p12 }
  0x1c   : > { %p839_p3 = pneg %p838_p0 }
  0x1e   : > { %p846_p9 = pnand %p845_p10, %p839_p3 }
  0x20   : > { %849 = shalt.err (!%p846_p9)
}
  0x21   : > { %s992_s20 = smov 128   ;;  %s993_s21 = smov 8  }
  0x22   : > { %s1256_s3 = sld [smem:[#allocation15_spill]]  ;;  %s861_s30 = scalar_lea.vmem %s254_s18, 512 }
  0x23   : > { %p862_p6 = scmp.ne.s32.totalorder %s254_s18, %s861_s30  ;;  %p869_p1 = scmp.lt.s32.totalorder %s254_s18, %s254_s18 }
  0x24   : > { %p870_p4 = scmp.lt.s32.totalorder %s861_s30, %s861_s30 }
  0x25   : > { %p864_p13 = pnand %p862_p6, %p826_p12 }
  0x26   : > { %p871_p5 = por %p870_p4, %p869_p1 }
  0x27   : > { %p865_p0 = pneg %p864_p13 }
  0x28   : > { %746 = dma.hbm_to_vmem [thread:$0]  (!%p1101_p11), %s1256_s3, 512, %s238_s15, [#allocation8], %s992_s20, %s992_s20, %s993_s21  }
  0x29   : > { %p872_p10 = pnand %p871_p5, %p865_p0 }
  0x2b   : > { %875 = shalt.err (!%p872_p10)
}
  0x2c   : > { %s1257_s5 = sld [smem:[#allocation16_spill]]  ;;  %s36_s15 = sadd.s32 1, %s984_s28 }
  0x2d   : > { %s43_s17 = sadd.s32 1, %s976_s26  ;;  %p38_p1 = scmp.ge.s32.totalorder %s36_s15, 2 }
  0x2e   : > { %p50_p4 = scmp.ne.s32.totalorder %s976_s26, %s972_s25  ;;  %p51_p6 = scmp.eq.s32.totalorder %s988_s29, 0 }
  0x2f   : > { %p760_p12 = scmp.lt.s32.totalorder %s988_s29, 2  ;;  %s1272_s15 = smov (%p38_p1, %s36_s15), 0 }
  0x30   : > { %1258 = sst [smem:[#allocation14_spill]] %s1272_s15  ;;  %p52_p3 = por %p51_p6, %p50_p4 }
  0x31   : > { %p1133_p7 = por %p1076_p2, %p50_p4  ;;  %s40_s19 = ssub.s32 %s984_s28, %s1272_s15 }
  0x32   : > { %749 = dma.hbm_to_vmem [thread:$0]  (!%p1101_p11), %s1257_s5, 512, %s254_s18, [#allocation8], %s992_s20, %s992_s20, %s993_s21  }
  0x33   : > { %s270_s22 = sand.u32 1, %s976_s26   ;;  %p41_p9 = scmp.eq.s32.totalorder %s40_s19, 0 }
  0x34   : > { %s682_s18 = sshll.u32 %s270_s22, 3  ;;  %s683_s20 = sshll.u32 %s984_s28, 7 }
  0x35   : > { %s1142_s21 = scalar_select %p41_p9, %s976_s26, %s43_s17  }
  0x36   : > { %s279_s8 = scalar_lea.hbm %s1236_s0, %s683_s20  ;;  %s274_s14 = scalar_lea.vmem [#allocation4], %s682_s18 }
  0x37   : > { %s281_s3 = sshll.u32 %s274_s14, 4  ;;  %p1149_p11 = pnand %p760_p12, %p52_p3  ;;  %s282_s3 = int_to_ptr.vmem [resolvable:$true] %s281_s3 }
  0x38   : > { %s271_s5 = scalar_lea.sflag [#allocation5], %s270_s22  ;;  %s889_s19 = scalar_lea.vmem %s282_s3, 128 }
  0x39   : > { %p878_p2 = pneg %p1149_p11  ;;  %p890_p13 = scmp.ne.s32.totalorder %s282_s3, %s889_s19 }
  0x3a   : > { %s994_s17 = smov [#allocation4]  }
  0x3b   : > { %p892_p0 = pnand %p890_p13, %p878_p2  ;;  %s894_s15 = sshll.u32 %s994_s17, 4  ;;  %s895_s15 = int_to_ptr.vmem [resolvable:$false] %s894_s15 }
  0x3c   : > { %s896_s20 = scalar_lea.vmem %s895_s15, 256  ;;  %p897_p10 = scmp.lt.s32.totalorder %s282_s3, %s895_s15 }
  0x3d   : > { %p893_p5 = pneg %p892_p0  ;;  %p898_p1 = scmp.lt.s32.totalorder %s896_s20, %s889_s19 }
  0x3f   : > { %p899_p4 = por %p898_p1, %p897_p10 }
  0x41   : > { %p900_p6 = pnand %p899_p4, %p893_p5 }
  0x43   : > { %903 = shalt.err (!%p900_p6)
}
  0x44   : > { %753 = dma.hbm_to_vmem [thread:$0]  (!%p1149_p11), %s279_s8, 128, %s282_s3, %s271_s5  }
  0x45   : > { %290 = sbr.rel (%p1092_p8) target bundleno = 711 (0x2c7), region = 48  ;;  %s1160_s22 = sand.u32 (!%p1092_p8), 1, %s972_s25  }
  0x46   : > { %s685_s18 = sshll.u32 (!%p1092_p8), %s1160_s22, 3  ;;  %s293_s23 = scalar_lea.sflag (!%p1092_p8), [#allocation5], %s1160_s22 }
  0x47   : > { %s296_s15 = scalar_lea.vmem (!%p1092_p8), [#allocation4], %s685_s18  ;;  %p1261_p12 = scmp.ne.s32.totalorder (!%p1092_p8), %s1252_s11, 0 }
  0x4a   : > { %955 = dma.done.wait (%p1261_p12), %s293_s23, 128  }
  0x4b   : > { %957 = vsyncadd (%p1261_p12), %s293_s23, 4294967168  ;;  %p1262_p3 = scmp.ne.s32.totalorder %s1250_s9, 0 }
  0x4d   : > { %959 = dma.done.wait (%p1262_p3), [#allocation8], 1024  }
  0x4e   : > { %961 = vsyncadd (%p1262_p3), [#allocation8], 4294966272  ;;  %vm340_vm0 = vcmask 261120   ;;  %v339_v0 = vld [vmem:[%s296_s15] sm:$0xff]  ;;  %v995_v4 = vmov 0.0   ;;  %vm996_vm1 = vmmov 0  }
  0x4f   : > { %v341_v1 = vsel %vm340_vm0, %v339_v0, 0.0  ;;  %v346_v2 = vmul.f32 %v339_v0, %v339_v0  ;;  %709 = vmatprep.subr.mxu0 %v995_v4  ;;  %375 = vst.msk [vmem:[#allocation3] sm:$0xff] %vm340_vm0, %v995_v4  ;;  %v380_v5 = vld [vmem:[#allocation7 + $0x18] sm:$0xff]  ;;  %v379_v6 = vld [vmem:[#allocation7 + $0x10] sm:$0xff]  ;;  %720 = vmatprep.subr.mxu1 %v995_v4  ;;  %v378_v7 = vld [vmem:[#allocation7 + $0x8] sm:$0xff]  ;;  %s696_s10 = sshll.u32 %s980_s27, 7 }
  0x50   : > { %342 = vadd.xlane.f32.xlu0 %v341_v1  ;;  %710 = vmatpush3.msra.mxu0 %v380_v5  ;;  %v377_v8 = vld [vmem:[#allocation7] sm:$0xff]  ;;  %v471_v25 = vld [vmem:[#allocation9 + $0x18] sm:$0xff]  ;;  %v470_v26 = vld [vmem:[#allocation9 + $0x10] sm:$0xff]  ;;  %s334_s19 = scalar_lea.vmem [#allocation10], %s685_s18  ;;  %s577_s15 = scalar_lea.hbm %s1243_s7, %s696_s10 }
  0x51   : > { %v347_v3 = vsel %vm340_vm0, %v346_v2, 0.0  ;;  %717 = vmatprep.mubr.msk.f32.mxu0 %vm996_vm1, %v995_v4  ;;  %711 = vmatprep.subr.mxu0 %v995_v4  ;;  %v689_v19 = vld [vmem:[%s1237_s1] ss:$0 sm:$0xff]  ;;  %v469_v27 = vld [vmem:[#allocation9 + $0x8] sm:$0xff]  ;;  %s579_s17 = sshll.u32 %s334_s19, 4  ;;  %s566_s3 = scalar_lea.sflag [#allocation6], %s1160_s22  ;;  %s580_s17 = int_to_ptr.vmem [resolvable:$true] %s579_s17 }
  0x52   : > { %728 = vmatprep.mubr.msk.f32.mxu1 %vm996_vm1, %v995_v4  ;;  %712 = vmatpush3.msra.mxu0 %v379_v6  ;;  %v690_v21 = vld [vmem:[%s1238_s2] ss:$0 sm:$0xff]  ;;  %s904_s5 = scalar_lea.vmem %s580_s17, 128  ;;  %s997_s27 = smov [#allocation10]  }
  0x53   : > { %713 = vmatprep.subr.mxu0 %v995_v4  ;;  %721 = vmatpush3.msra.mxu1 %v471_v25  ;;  %v468_v28 = vld [vmem:[#allocation9] sm:$0xff]  ;;  %p905_p8 = scmp.ne.s32.totalorder %s580_s17, %s904_s5  ;;  %s908_s9 = sshll.u32 %s997_s27, 4  ;;  %s909_s9 = int_to_ptr.vmem [resolvable:$false] %s908_s9 }
  0x54   : > { %348 = vadd.xlane.f32.xlu0 %v347_v3  ;;  %714 = vmatpush3.msra.mxu0 %v378_v7  ;;  %v691_v29 = vld [vmem:[%s1240_s4] ss:$0 sm:$0xff]  ;;  %s910_s18 = scalar_lea.vmem %s909_s9, 256  ;;  %p911_p2 = scmp.lt.s32.totalorder %s580_s17, %s909_s9 }
  0x55   : > { %715 = vmatprep.subr.mxu0 %v995_v4  ;;  %722 = vmatprep.subr.mxu1 %v995_v4  ;;  %v694_v42 = vld [vmem:[%s1242_s6] ss:$0 sm:$0xff]  ;;  %p906_p9 = pnand %p905_p8, %p1133_p7  ;;  %p912_p13 = scmp.lt.s32.totalorder %s910_s18, %s904_s5 }
  0x56   : > { %716 = vmatpush3.msra.mxu0 %v377_v8  ;;  %723 = vmatpush3.msra.mxu1 %v470_v26  ;;  %v467_v38 = vld [vmem:[#allocation3] sm:$0xff] }
  0x57   : > { %724 = vmatprep.subr.mxu1 %v995_v4  ;;  %p907_p11 = pneg %p906_p9  ;;  %p913_p0 = por %p912_p13, %p911_p2 }
  0x58   : > { %725 = vmatpush3.msra.mxu1 %v469_v27 }
  0x59   : > { %726 = vmatprep.subr.mxu1 %v995_v4  ;;  %p914_p5 = pnand %p913_p0, %p907_p11 }
  0x5a   : > { %727 = vmatpush3.msra.mxu1 %v468_v28 }
  0xd9   : > { %v343_v9 = vpop.xlane.xlu0 %342 }
  0xda   : > { %v345_v10 = vmul.f32 0.03125, %v343_v9 }
  0xdc   : > { %v351_v12 = vmul.f32 %v345_v10, %v345_v10  ;;  %v354_v17 = vsub.f32 %v339_v0, %v345_v10 }
  0xdd   : > { %v349_v11 = vpop.xlane.xlu0 %348 }
  0xde   : > { %v350_v13 = vmul.f32 0.03125, %v349_v11 }
  0xe0   : > { %v352_v14 = vsub.f32 %v350_v13, %v351_v12 }
  0xe2   : > { %v353_v15 = vmax.f32 %v352_v14, 0.0 }
  0xe4   : > { %v355_v16 = vadd.f32 1e-05, %v353_v15 }
  0xe6   : > { %818 = vrsqrt.f32 %v355_v16 }
  0xf3   : > { %v819_v18 = vpop.eup %818 }
  0xf4   : > { %v357_v20 = vmul.f32 %v819_v18, %v354_v17 }
  0xf6   : > { %v365_v22 = vmul.f32 %v689_v19, %v357_v20 }
  0xf8   : > { %v373_v23 = vadd.f32 %v690_v21, %v365_v22 }
  0xfa   : > { %374 = vst.msk [vmem:[#allocation2] sm:$0xff] %vm340_vm0, %v373_v23 }
 0x101   : > { %v376_v24 = vld [vmem:[#allocation2] sm:$0xff] }
 0x102   : > { %718 = vmatmul.mubr.msk.f32.vlgmr.msra.gmra.mxu0 %vm340_vm0, %v376_v24 }
 0x1c2   : > { %v458_v30 = vpop.f32.mrf.mxu0 }
 0x1c3   : > { %v459_v31 = vadd.f32 %v691_v29, %v458_v30 }
 0x1c4   : > { %v719_v32 = vpop.f32.mrf.mxu0 }
 0x1c5   : > { %v463_v33 = vmul.f32 0.70710677, %v459_v31  ;;  %v462_v35 = vmul.f32 0.5, %v459_v31 }
 0x1c7   : > { %820 = verf.f32 %v463_v33 }
 0x1d4   : > { %v821_v34 = vpop.eup %820 }
 0x1d5   : > { %v465_v36 = vadd.f32 1.0, %v821_v34 }
 0x1d7   : > { %v466_v37 = vmul.f32 %v465_v36, %v462_v35 }
 0x1d9   : > { %729 = vmatmul.mubr.msk.f32.vlgmr.msra.gmra.mxu1 %vm340_vm0, %v466_v37 }
 0x299   : > { %v541_v39 = vpop.f32.mrf.mxu1 }
 0x29a   : > { %v545_v40 = vadd.f32 %v541_v39, %v467_v38 }
 0x29b   : > { %v730_v41 = vpop.f32.mrf.mxu1 }
 0x29c   : > { %546 = vst.msk [vmem:[#allocation3] sm:$0xff] %vm340_vm0, %v545_v40 }
 0x2a3   : > { %v550_v43 = vld [vmem:[#allocation3] sm:$0xff] }
 0x2a4   : > { %v558_v44 = vadd.f32 %v694_v42, %v550_v43 }
 0x2a6   : > { %v560_v45 = vmul.f32 0.70710677, %v558_v44  ;;  %v559_v47 = vmul.f32 0.5, %v558_v44 }
 0x2a8   : > { %822 = verf.f32 %v560_v45 }
 0x2b5   : > { %v823_v46 = vpop.eup %822 }
 0x2b6   : > { %v562_v48 = vadd.f32 1.0, %v823_v46 }
 0x2b8   : > { %v563_v49 = vmul.f32 %v562_v48, %v559_v47 }
 0x2ba   : > { %564 = vst.msk [vmem:[%s334_s19] sm:$0xff] %vm340_vm0, %v563_v49 }
 0x2bb   : > { %917 = shalt.err (!%p914_p5)
}
 0x2bc   : > { %s918_s11 = scalar_lea.hbm %s577_s15, 128  ;;  %s922_s30 = scalar_lea.hbm %s1243_s7, 256 }
 0x2bd   : > { %p919_p10 = scmp.ne.s32.totalorder %s577_s15, %s918_s11  ;;  %p923_p6 = scmp.lt.s32.totalorder %s577_s15, %s1243_s7 }
 0x2be   : > { %p924_p12 = scmp.lt.s32.totalorder %s922_s30, %s918_s11 }
 0x2bf   : > { %p920_p1 = pnand %p919_p10, %p1133_p7 }
 0x2c0   : > { %p925_p3 = por %p924_p12, %p923_p6 }
 0x2c1   : > { %p921_p4 = pneg %p920_p1 }
 0x2c3   : > { %p926_p8 = pnand %p925_p3, %p921_p4 }
 0x2c5   : > { %929 = shalt.err (!%p926_p8)
}
 0x2c6   : > { %741 = dma.vmem_to_hbm [thread:$0]  (%p1133_p7), %s580_s17, 128, %s577_s15, %s566_s3  }
 0x2c7 PF: > { %s591_s10 = sand.u32 1, %s968_s24   ;;  %p1263_p9 = scmp.ne.s32.totalorder %s1253_s12, 0 }
 0x2c8   : > { %p1264_p11 = scmp.ge.s32.totalorder %s988_s29, 2  ;;  %s592_s19 = scalar_lea.sflag [#allocation6], %s591_s10 }
 0x2ca   : > { %p755_p2 = pnand %p1264_p11, %p1263_p9 }
 0x2cc   : > { %p756_p13 = pneg %p755_p2 }
 0x2ce   : > { %963 = dma.done.wait (%p756_p13), %s592_s19, 128  }
 0x2cf   : > { %965 = vsyncadd (%p756_p13), %s592_s19, 4294967168  ;;  %s24_s29 = sadd.s32 1, %s988_s29   ;;  %s1265_s16 = sld [smem:[#allocation14_spill]] }
 0x2d0   : > { %p21_p0 = scmp.ge.s32.totalorder %s24_s29, 4   ;;  %s1266_s24 = smov %s972_s25 }
 0x2d1   : > { %s1267_s25 = smov %s976_s26  ;;  %s1268_s26 = smov %s1142_s21 }
 0x2d2   : > { %s1269_s27 = smov %s984_s28  ;;  %23 = sbr.rel (!%p21_p0) target bundleno = 10 (0xa), region = 109 }
 0x2d5   : > { %s1270_s28 = smov %s1265_s16 }
 0x2d7   :  { %597 = vsyncpa [#allocation5], 1 }
 0x2d8   :  { %599 = vsyncpa [#allocation5 + $0x1], 1 }
 0x2d9   :  { %600 = vsyncpa [#allocation8], 1 }
 0x2da   :  { %601 = vsyncpa [#allocation6], 1 }
 0x2db   :  { %603 = vsyncpa [#allocation6 + $0x1], 1 }

</bundles_post_ra>
